<compile_context>
chip_gen: v5e
topology: v5e:2x2
jax: 0.10.0
libtpu: 0.0.40
codegen_flags: <defaults>
</compile_context>

<pallas_src>
import math
from functools import partial

import jax
import jax.numpy as jnp
from jax.experimental import pallas as pl
from jax.experimental.pallas import tpu as pltpu


# ---------------------------------------------------------------------------
# Hardware-aware configuration / tiling helpers
# ---------------------------------------------------------------------------

def _hw_config():
    """Generation-aware tiling knobs (v5e / v6e / v7x)."""
    try:
        kind = jax.devices()[0].device_kind.lower()
    except Exception:
        kind = ""
    is_v7 = "v7" in kind
    is_v5e = ("v5e" in kind) or ("v5 lite" in kind) or ("v5litepod" in kind)
    return dict(
        # v5e's 4x(128x128) MXU saturates at 128-row tiles; v6e/v7x want 256.
        row_target=128 if is_v5e else 256,
        # Only v7x has 2 TensorCores/chip -> keep >=2 parallel grid steps there.
        multi_tc=is_v7,
        # v7x has 64 MiB VMEM per TC -> smaller FFN reduction tile.
        ffn_k_target=256 if is_v7 else 512,
        vmem_limit=(48 << 20) if is_v7 else ((64 << 20) if kind else (32 << 20)),
    )


def _round_up(x, m):
    return ((x + m - 1) // m) * m


def _row_tile(R, cfg):
    """Row tile for flattened (B*S, D) activations."""
    rt = min(cfg["row_target"], _round_up(R, 8))
    # Keep >=2 grid steps only when there are 2 TensorCores to feed (v7x);
    # on single-TC chips (v5e/v6e) halving the tile just doubles step overhead.
    if cfg["multi_tc"] and R > 8 and _round_up(R, rt) // rt < 2:
        rt = _round_up(pl.cdiv(R, 2), 8)
    return rt


def _pick_k_tile(K, target):
    """Reduction tile over d_ff so both FFN weight blocks stay VMEM-friendly."""
    if K <= target:
        return K
    for t in (target, 512, 256, 128):
        if t <= target and K % t == 0:
            return t
    return K   # fallback: keep whole reduction resident


def _pick_q_tile(S, target):
    """Query tile for attention (divides S so no key/mask padding is needed)."""
    if S <= target:
        return S
    for t in (target, 256, 128, 64, 32, 16, 8):
        if t <= target and S % t == 0:
            return t
    return S   # fallback: whole sequence per step (correct, more VMEM)


def _pad_rows(x, Rp):
    R = x.shape[0]
    return x if Rp == R else jnp.pad(x, ((0, Rp - R), (0, 0)))


def _nbytes(*arrs):
    return int(sum(int(a.size) * a.dtype.itemsize for a in arrs))


# ---------------------------------------------------------------------------
# Single-buffering of grid-invariant blocks (probed once, with fallback)
# ---------------------------------------------------------------------------

_BUFFERED1_OK = None


def _buffered1_supported():
    """Probe whether pipeline_mode=pl.Buffered(1) lowers on this backend."""
    global _BUFFERED1_OK
    if _BUFFERED1_OK is None:
        try:
            def _k(c_ref, x_ref, o_ref):
                o_ref[...] = x_ref[...] + c_ref[...]

            const_spec = pl.BlockSpec((8, 128), lambda i: (0, 0),
                                      pipeline_mode=pl.Buffered(1))
            out = pl.pallas_call(
                _k,
                out_shape=jax.ShapeDtypeStruct((16, 128), jnp.float32),
                grid=(2,),
                in_specs=[const_spec, pl.BlockSpec((8, 128), lambda i: (i, 0))],
                out_specs=pl.BlockSpec((8, 128), lambda i: (i, 0)),
            )(jnp.zeros((8, 128), jnp.float32), jnp.zeros((16, 128), jnp.float32))
            jax.block_until_ready(out)
            _BUFFERED1_OK = True
        except Exception:
            _BUFFERED1_OK = False
    return _BUFFERED1_OK


def _invariant_spec(block_shape, index_map):
    """BlockSpec for grid-invariant blocks: single-buffered (halves their VMEM)."""
    if _buffered1_supported():
        return pl.BlockSpec(block_shape, index_map, pipeline_mode=pl.Buffered(1))
    return pl.BlockSpec(block_shape, index_map)


# ---------------------------------------------------------------------------
# Kernels
# ---------------------------------------------------------------------------

def _qkv_kernel(x_ref, w_ref, b_ref, q_ref, k_ref, v_ref):
    # One wide matmul (rt, D) @ (D, 3D); split on D column boundaries
    # (128-aligned whenever D is a multiple of 128).
    D = q_ref.shape[1]
    qkv = (jnp.dot(x_ref[...], w_ref[...], preferred_element_type=jnp.float32)
           + b_ref[...])
    q_ref[...] = qkv[:, 0:D].astype(q_ref.dtype)
    k_ref[...] = qkv[:, D:2 * D].astype(k_ref.dtype)
    v_ref[...] = qkv[:, 2 * D:3 * D].astype(v_ref.dtype)


def _mha_kernel(q_ref, k_ref, v_ref, m_ref, o_ref, *rest,
                num_heads, scale, store_weights):
    # grid = (B, S // tq): one batch element x one query tile per step,
    # all heads handled inside (amortizes per-step overhead, keeps the output
    # store lane-dense (tq, D) via the VMEM scratch slab).
    if store_weights:
        w_ref, ctx_ref = rest
    else:
        (ctx_ref,) = rest

    D = k_ref.shape[2]
    dk = D // num_heads
    neg_mask = m_ref[...] == 0                         # (tq, S), loaded once

    for h in range(num_heads):                         # static unroll over heads
        c0 = h * dk
        # TODO(synk): for dk < 128 these per-head lane slices straddle (8,128)
        # tiles; production head dims (dk >= 128) slice on lane boundaries.
        q = q_ref[0, :, c0:c0 + dk].astype(jnp.float32)    # (tq, dk)
        k = k_ref[0, :, c0:c0 + dk].astype(jnp.float32)    # (S,  dk)
        v = v_ref[0, :, c0:c0 + dk].astype(jnp.float32)    # (S,  dk)

        # Contract on the last dims -> q @ k^T without an explicit transpose.
        s = jax.lax.dot_general(q, k, (((1,), (1,)), ((), ())),
                                preferred_element_type=jnp.float32) * scale
        s = jnp.where(neg_mask, -1e9, s)               # masked_fill(mask==0, -1e9)
        s = s - jnp.max(s, axis=-1, keepdims=True)
        e = jnp.exp(s)
        inv_l = pl.reciprocal(jnp.sum(e, axis=-1, keepdims=True), approx=True)
        w = e * inv_l                                  # softmax (EUP recip + VPU mul)
        if store_weights:
            w_ref[0, h] = w.astype(w_ref.dtype)
        ctx_ref[:, c0:c0 + dk] = jnp.dot(w, v, preferred_element_type=jnp.float32)

    o_ref[0] = ctx_ref[...].astype(o_ref.dtype)        # single lane-dense store


def _proj_add_ln_kernel(x_ref, a_ref, w_ref, b_ref, g_ref, beta_ref, o_ref, *, eps):
    # out = LayerNorm(x + attn @ Wo + bo)
    proj = (jnp.dot(a_ref[...], w_ref[...], preferred_element_type=jnp.float32)
            + b_ref[...])
    h = x_ref[...].astype(jnp.float32) + proj
    mean = jnp.mean(h, axis=-1, keepdims=True)
    c = h - mean
    var = jnp.mean(c * c, axis=-1, keepdims=True)
    o_ref[...] = (c * jax.lax.rsqrt(var + eps) * g_ref[...]
                  + beta_ref[...]).astype(o_ref.dtype)


def _ffn_add_ln_kernel(x_ref, w1_ref, b1_ref, w2_ref, b2_ref, g_ref, beta_ref,
                       o_ref, acc_ref, *, eps):
    # out = LayerNorm(x + relu(x @ W1 + b1) @ W2 + b2), reduction-tiled over d_ff.
    k = pl.program_id(1)

    @pl.when(k == 0)
    def _():
        acc_ref[...] = jnp.zeros_like(acc_ref)

    h = (jnp.dot(x_ref[...], w1_ref[...], preferred_element_type=jnp.float32)
         + b1_ref[...])
    h = jnp.maximum(h, 0.0)                            # ReLU (per-column, tile-safe)
    acc_ref[...] += jnp.dot(h, w2_ref[...], preferred_element_type=jnp.float32)

    @pl.when(k == pl.num_programs(1) - 1)
    def _():
        y = x_ref[...].astype(jnp.float32) + acc_ref[...] + b2_ref[...]
        mean = jnp.mean(y, axis=-1, keepdims=True)
        c = y - mean
        var = jnp.mean(c * c, axis=-1, keepdims=True)
        o_ref[...] = (c * jax.lax.rsqrt(var + eps) * g_ref[...]
                      + beta_ref[...]).astype(o_ref.dtype)


# ---------------------------------------------------------------------------
# pallas_call wrappers
# ---------------------------------------------------------------------------

def qkv_projection(x, wqkv, bqkv, *, cfg):
    R, D = x.shape
    rt = _row_tile(R, cfg)
    Rp = _round_up(R, rt)
    xp = _pad_rows(x, Rp)

    row_spec = pl.BlockSpec((rt, D), lambda i: (i, 0))
    w_spec = _invariant_spec((D, 3 * D), lambda i: (0, 0))
    b_spec = _invariant_spec((1, 3 * D), lambda i: (0, 0))

    itemsize = x.dtype.itemsize
    q, k, v = pl.pallas_call(
        _qkv_kernel,
        out_shape=tuple(jax.ShapeDtypeStruct((Rp, D), x.dtype) for _ in range(3)),
        grid=(Rp // rt,),
        in_specs=[row_spec, w_spec, b_spec],
        out_specs=(row_spec, row_spec, row_spec),
        compiler_params=pltpu.CompilerParams(
            dimension_semantics=("parallel",),
            vmem_limit_bytes=cfg["vmem_limit"]),
        cost_estimate=pl.CostEstimate(
            flops=int(2 * Rp * D * 3 * D),
            transcendentals=0,
            bytes_accessed=_nbytes(xp, wqkv, bqkv) + int(3 * Rp * D * itemsize)),
    )(xp, wqkv, bqkv)

    if Rp != R:
        q, k, v = q[:R], k[:R], v[:R]
    return q, k, v


def mha_attention(q, k, v, mask, *, num_heads, cfg, store_weights=True):
    # q/k/v: (B, S, D) row-major (free reshape from the flattened projections).
    B, S, D = q.shape
    dk = D // num_heads
    tq = _pick_q_tile(S, cfg["row_target"])
    nq = S // tq

    q_spec = pl.BlockSpec((1, tq, D), lambda b, qi: (b, qi, 0))
    kv_spec = pl.BlockSpec((1, S, D), lambda b, qi: (b, 0, 0))
    m_spec = pl.BlockSpec((tq, S), lambda b, qi: (qi, 0))
    o_spec = pl.BlockSpec((1, tq, D), lambda b, qi: (b, qi, 0))

    if store_weights:
        # Weights stored in the input dtype (bf16 inputs -> halved writeback).
        out_shape = (jax.ShapeDtypeStruct((B, S, D), q.dtype),
                     jax.ShapeDtypeStruct((B, num_heads, S, S), q.dtype))
        out_specs = (o_spec,
                     pl.BlockSpec((1, num_heads, tq, S), lambda b, qi: (b, 0, qi, 0)))
    else:
        out_shape = jax.ShapeDtypeStruct((B, S, D), q.dtype)
        out_specs = o_spec

    bytes_out = _nbytes(q) + (int(B * num_heads * S * S) * q.dtype.itemsize
                              if store_weights else 0)
    res = pl.pallas_call(
        partial(_mha_kernel, num_heads=num_heads, scale=1.0 / math.sqrt(dk),
                store_weights=store_weights),
        out_shape=out_shape,
        grid=(B, nq),
        in_specs=[q_spec, kv_spec, kv_spec, m_spec],
        out_specs=out_specs,
        scratch_shapes=[pltpu.VMEM((tq, D), jnp.float32)],
        compiler_params=pltpu.CompilerParams(
            dimension_semantics=("parallel", "parallel"),
            vmem_limit_bytes=cfg["vmem_limit"]),
        cost_estimate=pl.CostEstimate(
            flops=int(4 * B * num_heads * S * S * dk),
            transcendentals=int(B * num_heads * S * S),
            bytes_accessed=_nbytes(q, k, v, mask) + bytes_out),
    )(q, k, v, mask)

    if store_weights:
        return res          # (context, weights)
    return res, None


def attn_proj_add_layernorm(x, attn, wo, bo, gamma, beta, *, cfg, eps=1e-5):
    R, D = x.shape
    rt = _row_tile(R, cfg)
    Rp = _round_up(R, rt)
    xp, ap = _pad_rows(x, Rp), _pad_rows(attn, Rp)

    row_spec = pl.BlockSpec((rt, D), lambda i: (i, 0))
    w_spec = _invariant_spec((D, D), lambda i: (0, 0))
    vec_spec = _invariant_spec((1, D), lambda i: (0, 0))

    out = pl.pallas_call(
        partial(_proj_add_ln_kernel, eps=eps),
        out_shape=jax.ShapeDtypeStruct((Rp, D), x.dtype),
        grid=(Rp // rt,),
        in_specs=[row_spec, row_spec, w_spec, vec_spec, vec_spec, vec_spec],
        out_specs=row_spec,
        compiler_params=pltpu.CompilerParams(
            dimension_semantics=("parallel",),
            vmem_limit_bytes=cfg["vmem_limit"]),
        cost_estimate=pl.CostEstimate(
            flops=int(2 * Rp * D * D),
            transcendentals=0,
            bytes_accessed=_nbytes(xp, ap, wo) + int(Rp * D * x.dtype.itemsize)),
    )(xp, ap, wo, bo, gamma, beta)
    return out[:R] if Rp != R else out


def ffn_add_layernorm(x, w1, b1, w2, b2, gamma, beta, *, cfg, eps=1e-5):
    R, D = x.shape
    Dff = w1.shape[1]
    rt = _row_tile(R, cfg)
    Rp = _round_up(R, rt)
    xp = _pad_rows(x, Rp)
    tk = _pick_k_tile(Dff, cfg["ffn_k_target"])

    x_spec = pl.BlockSpec((rt, D), lambda i, kk: (i, 0))    # resident across kk
    vec_d = _invariant_spec((1, D), lambda i, kk: (0, 0))   # b2 / gamma / beta

    out = pl.pallas_call(
        partial(_ffn_add_ln_kernel, eps=eps),
        out_shape=jax.ShapeDtypeStruct((Rp, D), x.dtype),
        grid=(Rp // rt, Dff // tk),
        in_specs=[x_spec,
                  pl.BlockSpec((D, tk), lambda i, kk: (0, kk)),
                  pl.BlockSpec((1, tk), lambda i, kk: (0, kk)),
                  pl.BlockSpec((tk, D), lambda i, kk: (kk, 0)),
                  vec_d, vec_d, vec_d],
        out_specs=pl.BlockSpec((rt, D), lambda i, kk: (i, 0)),
        scratch_shapes=[pltpu.VMEM((rt, D), jnp.float32)],
        compiler_params=pltpu.CompilerParams(
            dimension_semantics=("parallel", "arbitrary"),
            vmem_limit_bytes=cfg["vmem_limit"]),
        cost_estimate=pl.CostEstimate(
            flops=int(4 * Rp * D * Dff),
            transcendentals=0,
            bytes_accessed=_nbytes(xp, w1, b1, w2) + int(Rp * D * x.dtype.itemsize)),
    )(xp, w1, b1, w2, b2, gamma, beta)
    return out[:R] if Rp != R else out


# ---------------------------------------------------------------------------
# DecoderBlock forward
# ---------------------------------------------------------------------------

def decoder_block_forward(params, x, enc_output, tgt_mask=None, src_mask=None,
                          *, return_attn_weights=True):
    # Reference forward never uses enc_output / src_mask (no cross-attention).
    del enc_output, src_mask
    cfg = _hw_config()
    B, S, D = x.shape
    H = params["num_heads"]
    xf = x.reshape(B * S, D)

    # Fused QKV projection (weights pre-concatenated at parameter-init time).
    q, k, v = qkv_projection(xf, params["wqkv"], params["bqkv"], cfg=cfg)

    if tgt_mask is None:
        tgt_mask = jnp.ones((S, S), jnp.float32)

    # (B*S, D) -> (B, S, D) reshapes are free (contiguous), no transposes needed.
    attn, attn_w = mha_attention(q.reshape(B, S, D), k.reshape(B, S, D),
                                 v.reshape(B, S, D), tgt_mask,
                                 num_heads=H, cfg=cfg,
                                 store_weights=return_attn_weights)

    h1 = attn_proj_add_layernorm(xf, attn.reshape(B * S, D),
                                 params["wo"], params["bo"],
                                 params["ln1_g"], params["ln1_b"], cfg=cfg)
    h2 = ffn_add_layernorm(h1, params["w1"], params["b1"],
                           params["w2"], params["b2"],
                           params["ln2_g"], params["ln2_b"], cfg=cfg)
    return h2.reshape(B, S, D), attn_w


def init_params(key, d_model, num_heads, d_ff):
    ks = jax.random.split(key, 6)

    def lin(k, din, dout):
        kw, kb = jax.random.split(k)
        s = 1.0 / math.sqrt(din)
        return (jax.random.uniform(kw, (din, dout), jnp.float32, -s, s),
                jax.random.uniform(kb, (1, dout), jnp.float32, -s, s))

    wq, bq = lin(ks[0], d_model, d_model)
    wk, bk = lin(ks[1], d_model, d_model)
    wv, bv = lin(ks[2], d_model, d_model)
    wo, bo = lin(ks[3], d_model, d_model)
    w1, b1 = lin(ks[4], d_model, d_ff)
    w2, b2 = lin(ks[5], d_ff, d_model)
    return dict(
        num_heads=num_heads,
        wq=wq, bq=bq, wk=wk, bk=bk, wv=wv, bv=bv, wo=wo, bo=bo,
        # pre-fused QKV weight/bias used by the Pallas path
        wqkv=jnp.concatenate([wq, wk, wv], axis=1),
        bqkv=jnp.concatenate([bq, bk, bv], axis=1),
        w1=w1, b1=b1, w2=w2, b2=b2,
        ln1_g=jnp.ones((1, d_model), jnp.float32),
        ln1_b=jnp.zeros((1, d_model), jnp.float32),
        ln2_g=jnp.ones((1, d_model), jnp.float32),
        ln2_b=jnp.zeros((1, d_model), jnp.float32),
    )


# Pure-JAX reference (numeric sanity check only).
def reference_forward(params, x, tgt_mask):
    B, S, D = x.shape
    H = params["num_heads"]
    dk = D // H
    xf = x.reshape(B * S, D)
    q = (xf @ params["wq"] + params["bq"]).reshape(B, S, H, dk).transpose(0, 2, 1, 3)
    k = (xf @ params["wk"] + params["bk"]).reshape(B, S, H, dk).transpose(0, 2, 1, 3)
    v = (xf @ params["wv"] + params["bv"]).reshape(B, S, H, dk).transpose(0, 2, 1, 3)
    s = jnp.einsum("bhqd,bhkd->bhqk", q, k) / math.sqrt(dk)
    s = jnp.where(tgt_mask[None, None] == 0, -1e9, s)
    w = jax.nn.softmax(s, axis=-1)
    a = jnp.einsum("bhqk,bhkd->bhqd", w, v).transpose(0, 2, 1, 3).reshape(B * S, D)
    a = a @ params["wo"] + params["bo"]

    def ln(h, g, b):
        m = h.mean(-1, keepdims=True)
        c = h - m
        var = (c * c).mean(-1, keepdims=True)
        return c * jax.lax.rsqrt(var + 1e-5) * g + b

    h1 = ln(xf + a, params["ln1_g"], params["ln1_b"])
    ff = jnp.maximum(h1 @ params["w1"] + params["b1"], 0.0) @ params["w2"] + params["b2"]
    h2 = ln(h1 + ff, params["ln2_g"], params["ln2_b"])
    return h2.reshape(B, S, D), w


if __name__ == "__main__":
    B, S, d_model, num_heads, d_ff = 2, 8, 32, 4, 64

    key = jax.random.PRNGKey(0)
    k_p, k_x, k_e = jax.random.split(key, 3)
    params = init_params(k_p, d_model, num_heads, d_ff)
    x = jax.random.normal(k_x, (B, S, d_model), jnp.float32)
    enc_output = jax.random.normal(k_e, (B, S, d_model), jnp.float32)
    tgt_mask = jnp.tril(jnp.ones((S, S), jnp.float32))   # causal mask

    out, attn_w = decoder_block_forward(params, x, enc_output, tgt_mask=tgt_mask)
    out = jax.block_until_ready(out)
    attn_w = jax.block_until_ready(attn_w)

    ref_out, ref_w = reference_forward(params, x, tgt_mask)
    assert out.shape == (B, S, d_model)
    assert attn_w.shape == (B, num_heads, S, S)
    # approx=True softmax reciprocal -> slightly looser (but still tight) tolerance
    assert jnp.allclose(out, ref_out, atol=2e-3, rtol=2e-3)
    assert jnp.allclose(attn_w, ref_w, atol=2e-3, rtol=2e-3)

    print("KERNEL_OK")
</pallas_src>

<mosaic_0001>
module attributes {stable_mosaic.version = 11 : i64} {
  func.func @_k(%arg0: i32, %arg1: memref<8x128xf32, #tpu.memory_space<vmem>>, %arg2: memref<8x128xf32, #tpu.memory_space<vmem>>, %arg3: memref<8x128xf32, #tpu.memory_space<vmem>>) attributes {dimension_semantics = [#tpu.dimension_semantics<arbitrary>], iteration_bounds = array<i64: 2>, scalar_prefetch = 0 : i64, scratch_operands = 0 : i64, tpu.core_type = #tpu.core_type<tc>, window_params = [{pipeline_mode = #tpu.pipeline_mode<synchronous>, transform_indices = @transform_0, window_bounds = array<i64: 8, 128>}, {transform_indices = @transform_1, window_bounds = array<i64: 8, 128>}, {transform_indices = @transform_2, window_bounds = array<i64: 8, 128>}]} {
    %c0 = arith.constant 0 : index
    %c0_0 = arith.constant 0 : index
    %0 = vector.load %arg2[%c0, %c0_0] : memref<8x128xf32, #tpu.memory_space<vmem>>, vector<8x128xf32>
    %c0_1 = arith.constant 0 : index
    %c0_2 = arith.constant 0 : index
    %1 = vector.load %arg1[%c0_1, %c0_2] : memref<8x128xf32, #tpu.memory_space<vmem>>, vector<8x128xf32>
    %2 = arith.addf %0, %1 : vector<8x128xf32>
    %c0_3 = arith.constant 0 : index
    %c0_4 = arith.constant 0 : index
    %3 = vector.load %arg3[%c0_3, %c0_4] : memref<8x128xf32, #tpu.memory_space<vmem>>, vector<8x128xf32>
    tpu.vector_store %arg3[%c0_3, %c0_4], %2 {strides = array<i32>} : memref<8x128xf32, #tpu.memory_space<vmem>>, vector<8x128xf32>,
    return
  }
  func.func @transform_0(%arg0: i32) -> (i32, i32) {
    %c0_i32 = arith.constant 0 : i32
    %c0_i32_0 = arith.constant 0 : i32
    %c0_i32_1 = arith.constant 0 : i32
    return %c0_i32, %c0_i32_0 : i32, i32
  }
  func.func @transform_1(%arg0: i32) -> (i32, i32) {
    %c0_i32 = arith.constant 0 : i32
    %c0_i32_0 = arith.constant 0 : i32
    return %arg0, %c0_i32 : i32, i32
  }
  func.func @transform_2(%arg0: i32) -> (i32, i32) {
    %c0_i32 = arith.constant 0 : i32
    %c0_i32_0 = arith.constant 0 : i32
    return %arg0, %c0_i32 : i32, i32
  }
}

module attributes {stable_mosaic.version = 11 : i64} {
  func.func @_qkv_kernel(%arg0: i32, %arg1: memref<16x32xf32, #tpu.memory_space<vmem>>, %arg2: memref<32x96xf32, #tpu.memory_space<vmem>>, %arg3: memref<1x96xf32, #tpu.memory_space<vmem>>, %arg4: memref<16x32xf32, #tpu.memory_space<vmem>>, %arg5: memref<16x32xf32, #tpu.memory_space<vmem>>, %arg6: memref<16x32xf32, #tpu.memory_space<vmem>>) attributes {dimension_semantics = [#tpu.dimension_semantics<parallel>], iteration_bounds = array<i64: 1>, scalar_prefetch = 0 : i64, scratch_operands = 0 : i64, tpu.core_type = #tpu.core_type<tc>, window_params = [{transform_indices = @transform_0, window_bounds = array<i64: 16, 32>}, {pipeline_mode = #tpu.pipeline_mode<synchronous>, transform_indices = @transform_1, window_bounds = array<i64: 32, 96>}, {pipeline_mode = #tpu.pipeline_mode<synchronous>, transform_indices = @transform_2, window_bounds = array<i64: 1, 96>}, {transform_indices = @transform_3, window_bounds = array<i64: 16, 32>}, {transform_indices = @transform_4, window_bounds = array<i64: 16, 32>}, {transform_indices = @transform_5, window_bounds = array<i64: 16, 32>}]} {
    %c0 = arith.constant 0 : index
    %c0_0 = arith.constant 0 : index
    %0 = vector.load %arg1[%c0, %c0_0] : memref<16x32xf32, #tpu.memory_space<vmem>>, vector<16x32xf32>
    %c0_1 = arith.constant 0 : index
    %c0_2 = arith.constant 0 : index
    %1 = vector.load %arg2[%c0_1, %c0_2] : memref<32x96xf32, #tpu.memory_space<vmem>>, vector<32x96xf32>
    %cst = arith.constant dense<0.000000e+00> : vector<16x96xf32>
    %2 = tpu.matmul %0, %1, %cst {dimension_numbers = #tpu.dot_dimension_numbers<[1], [0], [0], [1], [0, 0, 1, 1], [], []>} : vector<16x32xf32>, vector<32x96xf32>, vector<16x96xf32> -> vector<16x96xf32>
    %c0_3 = arith.constant 0 : index
    %c0_4 = arith.constant 0 : index
    %3 = vector.load %arg3[%c0_3, %c0_4] : memref<1x96xf32, #tpu.memory_space<vmem>>, vector<1x96xf32>
    %4 = vector.broadcast %3 : vector<1x96xf32> to vector<16x96xf32>
    %5 = arith.addf %2, %4 : vector<16x96xf32>
    %6 = vector.extract_strided_slice %5 {offsets = [0, 0], sizes = [16, 32], strides = [1, 1]} : vector<16x96xf32> to vector<16x32xf32>
    %c0_5 = arith.constant 0 : index
    %c0_6 = arith.constant 0 : index
    %7 = vector.load %arg4[%c0_5, %c0_6] : memref<16x32xf32, #tpu.memory_space<vmem>>, vector<16x32xf32>
    tpu.vector_store %arg4[%c0_5, %c0_6], %6 {strides = array<i32>} : memref<16x32xf32, #tpu.memory_space<vmem>>, vector<16x32xf32>,
    %8 = vector.extract_strided_slice %5 {offsets = [0, 32], sizes = [16, 32], strides = [1, 1]} : vector<16x96xf32> to vector<16x32xf32>
    %c0_7 = arith.constant 0 : index
    %c0_8 = arith.constant 0 : index
    %9 = vector.load %arg5[%c0_7, %c0_8] : memref<16x32xf32, #tpu.memory_space<vmem>>, vector<16x32xf32>
    tpu.vector_store %arg5[%c0_7, %c0_8], %8 {strides = array<i32>} : memref<16x32xf32, #tpu.memory_space<vmem>>, vector<16x32xf32>,
    %10 = vector.extract_strided_slice %5 {offsets = [0, 64], sizes = [16, 32], strides = [1, 1]} : vector<16x96xf32> to vector<16x32xf32>
    %c0_9 = arith.constant 0 : index
    %c0_10 = arith.constant 0 : index
    %11 = vector.load %arg6[%c0_9, %c0_10] : memref<16x32xf32, #tpu.memory_space<vmem>>, vector<16x32xf32>
    tpu.vector_store %arg6[%c0_9, %c0_10], %10 {strides = array<i32>} : memref<16x32xf32, #tpu.memory_space<vmem>>, vector<16x32xf32>,
    return
  }
  func.func @transform_0(%arg0: i32) -> (i32, i32) {
    %c0_i32 = arith.constant 0 : i32
    %c0_i32_0 = arith.constant 0 : i32
    return %arg0, %c0_i32 : i32, i32
  }
  func.func @transform_1(%arg0: i32) -> (i32, i32) {
    %c0_i32 = arith.constant 0 : i32
    %c0_i32_0 = arith.constant 0 : i32
    %c0_i32_1 = arith.constant 0 : i32
    return %c0_i32, %c0_i32_0 : i32, i32
  }
  func.func @transform_2(%arg0: i32) -> (i32, i32) {
    %c0_i32 = arith.constant 0 : i32
    %c0_i32_0 = arith.constant 0 : i32
    %c0_i32_1 = arith.constant 0 : i32
    return %c0_i32, %c0_i32_0 : i32, i32
  }
  func.func @transform_3(%arg0: i32) -> (i32, i32) {
    %c0_i32 = arith.constant 0 : i32
    %c0_i32_0 = arith.constant 0 : i32
    return %arg0, %c0_i32 : i32, i32
  }
  func.func @transform_4(%arg0: i32) -> (i32, i32) {
    %c0_i32 = arith.constant 0 : i32
    %c0_i32_0 = arith.constant 0 : i32
    return %arg0, %c0_i32 : i32, i32
  }
  func.func @transform_5(%arg0: i32) -> (i32, i32) {
    %c0_i32 = arith.constant 0 : i32
    %c0_i32_0 = arith.constant 0 : i32
    return %arg0, %c0_i32 : i32, i32
  }
}

</mosaic_0001>

<bundles_post_ra>
// kernel: tpu_custom_call.1
= control target key start
LH: loop header
LB: loop body
LE: loop exit
PB: predicated region body
PF: predicated region fallthrough
CT: control target
= control target key end

     0   :  { %7 = vsyncpa [#allocation3], 0  ;;  %s635_s0 = inlined_call_operand.hbm [shape: f32[8,128], index: 0, kind: input, shape index: {}]   ;;  %s636_s1 = inlined_call_operand.hbm [shape: f32[16,128], index: 1, kind: input, shape index: {}]   ;;  %s637_s2 = inlined_call_operand.hbm [shape: f32[16,128], index: 2, kind: output, shape index: {}]  }
   0x1   :  { %8 = vsyncpa [#allocation6], 0 }
   0x2   :  { %10 = vsyncpa [#allocation6 + $0x1], 0 }
   0x3   :  { %11 = vsyncpa [#allocation4], 0 }
   0x4   :  { %13 = vsyncpa [#allocation4 + $0x1], 0  ;;  %s497_s9 = smov 0   ;;  %s499_s10 = smov 0  }
   0x5   :  { %s501_s11 = smov 0   ;;  %s503_s12 = smov 0  }
   0x6 LB: > { %s518_s13 = sadd.s32 4294967295, %s479_s12   ;;  %s278_s14 = sadd.s32 4294967294, %s479_s12   ;;  %s479_s12 = sphi %s503_s12, %s647_s12   ;;  %s475_s11 = sphi %s501_s11, %s646_s11   ;;  %s471_s10 = sphi %s499_s10, %s645_s10   ;;  %s467_s9 = sphi %s497_s9, %s644_s9  }
   0x7   : > { %p60_p0 = scmp.ne.s32.totalorder %s471_s10, %s467_s9  ;;  %p61_p1 = scmp.eq.s32.totalorder %s518_s13, 0 }
   0x8   : > { %p84_p2 = scmp.eq.s32.totalorder %s518_s13, 1  ;;  %p90_p3 = scmp.eq.s32.totalorder %s278_s14, 1 }
   0x9   : > { %p527_p4 = por %p61_p1, %p60_p0  ;;  %p279_p5 = scmp.ge.s32.totalorder %s479_s12, 1 }
   0xa   : > { %p532_p6 = por %p90_p3, %p60_p0  ;;  %p97_p7 = scmp.lt.s32.totalorder %s479_s12, 3 }
   0xb   : > { %s109_s19 = sshll.u32 %s635_s0, 4  ;;  %s481_s21 = smov [#allocation2]   ;;  %s110_s19 = int_to_ptr.hbm [resolvable:$true] %s109_s19 }
   0xc   : > { %p540_p8 = pnand %p279_p5, %p97_p7  ;;  %s111_s22 = sshll.u32 %s481_s21, 4  ;;  %s112_s22 = int_to_ptr.vmem [resolvable:$true] %s111_s22 }
   0xd   : > { %s550_s23 = sadd.s32 1, %s479_s12   ;;  %s47_s24 = sadd.s32 1, %s475_s11 }
   0xe   : > { %p300_p10 = pneg %p540_p8  ;;  %s44_s25 = ssub.s32 %s479_s12, %s550_s23 }
   0xf   : > { %p45_p12 = scmp.eq.s32.totalorder %s44_s25, 0  ;;  %p54_p13 = scmp.ne.s32.totalorder %s475_s11, %s471_s10 }
  0x10   : > { %p301_p11 = pnand %p300_p10, %p61_p1  ;;  %p55_p0 = scmp.eq.s32.totalorder %s479_s12, 0 }
  0x11   : > { %s559_s26 = scalar_select %p45_p12, %s475_s11, %s47_s24  }
  0x12   : > { %303 = dma.hbm_to_vmem [thread:$0]  (!%p301_p11), %s110_s19, 128, %s112_s22, [#allocation3]  }
  0x13   : > { %p563_p3 = por %p84_p2, %p54_p13  ;;  %p313_p5 = scmp.lt.s32.totalorder %s479_s12, 2 }
  0x14   : > { %s122_s28 = sand.u32 1, %s475_s11   ;;  %s283_s29 = sshll.u32 %s479_s12, 3 }
  0x15   : > { %p56_p7 = por %p55_p0, %p54_p13  ;;  %s282_s30 = sshll.u32 %s122_s28, 3 }
  0x16   : > { %s130_s5 = scalar_lea.hbm %s636_s1, %s283_s29  ;;  %s126_s7 = scalar_lea.vmem [#allocation5], %s282_s30 }
  0x17   : > { %s132_s6 = sshll.u32 %s130_s5, 4  ;;  %s134_s8 = sshll.u32 %s126_s7, 4  ;;  %s133_s6 = int_to_ptr.hbm [resolvable:$true] %s132_s6  ;;  %s135_s8 = int_to_ptr.vmem [resolvable:$true] %s134_s8 }
  0x18   : > { %p573_p10 = pnand %p313_p5, %p56_p7  ;;  %s123_s17 = scalar_lea.sflag [#allocation6], %s122_s28 }
  0x19   : > { %s379_s18 = sshra.s32 %s133_s6, 4  ;;  %s386_s24 = scalar_lea.hbm %s636_s1, 16  ;;  %s380_s18 = int_to_ptr.hbm [resolvable:$true] %s379_s18 }
  0x1a   : > { %s381_s19 = scalar_lea.hbm %s380_s18, 8  ;;  %p383_p11 = pneg %p573_p10 }
  0x1b   : > { %p382_p2 = scmp.ne.s32.totalorder %s380_s18, %s381_s19  ;;  %p387_p0 = scmp.lt.s32.totalorder %s380_s18, %s636_s1 }
  0x1c   : > { %p388_p5 = scmp.lt.s32.totalorder %s386_s24, %s381_s19 }
  0x1d   : > { %p384_p12 = pnand %p383_p11, %p382_p2 }
  0x1e   : > { %p389_p7 = por %p388_p5, %p387_p0 }
  0x1f   : > { %p385_p13 = pneg %p384_p12 }
  0x21   : > { %p390_p9 = pnand %p389_p7, %p385_p13 }
  0x23   : > { %393 = shalt.err (!%p390_p9)
}
  0x24   : > { %307 = dma.hbm_to_vmem [thread:$0]  (!%p573_p10), %s133_s6, 128, %s135_s8, %s123_s17  }
  0x25   : > { %143 = sbr.rel (%p540_p8) target bundleno = 62 (0x3e), region = 28 }
  0x2a   : > { %454 = dma.done.wait (%p61_p1), [#allocation3], 128  }
  0x2b   : > { %456 = vsyncadd (%p61_p1), [#allocation3], 4294967168  ;;  %s594_s28 = sand.u32 1, %s471_s10  }
  0x2c   : > { %s286_s30 = sshll.u32 %s594_s28, 3  ;;  %s151_s3 = scalar_lea.sflag [#allocation6], %s594_s28 }
  0x2d   : > { %s154_s4 = scalar_lea.vmem [#allocation5], %s286_s30 }
  0x2e   : > { %458 = dma.done.wait (%p527_p4), %s151_s3, 128  }
  0x2f   : > { %460 = vsyncadd (%p527_p4), %s151_s3, 4294967168  ;;  %s289_s20 = sshll.u32 %s518_s13, 3  ;;  %s175_s8 = scalar_lea.vmem [#allocation7], %s286_s30  ;;  %v176_v0 = vld [vmem:[%s154_s4] sm:$0xff]  ;;  %v177_v1 = vld [vmem:[#allocation2] sm:$0xff] }
  0x30   : > { %s191_s7 = scalar_lea.hbm %s637_s2, %s289_s20  ;;  %s193_s14 = sshll.u32 %s175_s8, 4  ;;  %v178_v2 = vadd.f32 %v177_v1, %v176_v0  ;;  %s194_s14 = int_to_ptr.vmem [resolvable:$true] %s193_s14 }
  0x31   : > { %s195_s17 = sshll.u32 %s191_s7, 4  ;;  %s181_s18 = scalar_lea.sflag [#allocation4], %s594_s28  ;;  %s196_s17 = int_to_ptr.hbm [resolvable:$true] %s195_s17 }
  0x32   : > { %179 = vst [vmem:[%s175_s8] sm:$0xff] %v178_v2  ;;  %s423_s15 = sshra.s32 %s196_s17, 4  ;;  %s429_s22 = scalar_lea.hbm %s637_s2, 16  ;;  %s424_s15 = int_to_ptr.hbm [resolvable:$true] %s423_s15 }
  0x33   : > { %s425_s19 = scalar_lea.hbm %s424_s15, 8  ;;  %p430_p9 = scmp.lt.s32.totalorder %s424_s15, %s637_s2 }
  0x34   : > { %p426_p1 = scmp.ne.s32.totalorder %s424_s15, %s425_s19  ;;  %p431_p10 = scmp.lt.s32.totalorder %s429_s22, %s425_s19 }
  0x36   : > { %p427_p4 = pnand %p426_p1, %p563_p3  ;;  %p432_p2 = por %p431_p10, %p430_p9 }
  0x38   : > { %p428_p8 = pneg %p427_p4 }
  0x3a   : > { %p433_p11 = pnand %p432_p2, %p428_p8 }
  0x3c   : > { %436 = shalt.err (!%p433_p11)
}
  0x3d   : > { %298 = dma.vmem_to_hbm [thread:$0]  (%p563_p3), %s194_s14, 128, %s196_s17, %s181_s18  }
  0x3e PF: > { %s207_s29 = sand.u32 1, %s467_s9   ;;  %p643_p12 = scmp.ge.s32.totalorder %s479_s12, 2 }
  0x3f   : > { %s208_s28 = scalar_lea.sflag [#allocation4], %s207_s29 }
  0x40   : > { %p309_p13 = pnand %p643_p12, %p532_p6 }
  0x42   : > { %p310_p0 = pneg %p309_p13 }
  0x44   : > { %462 = dma.done.wait (%p310_p0), %s208_s28, 128  }
  0x45   : > { %464 = vsyncadd (%p310_p0), %s208_s28, 4294967168  ;;  %p16_p5 = scmp.ge.s32.totalorder %s550_s23, 4   ;;  %s644_s9 = smov %s471_s10 }
  0x46   : > { %s645_s10 = smov %s475_s11  ;;  %s646_s11 = smov %s559_s26 }
  0x47   : > { %s647_s12 = smov %s550_s23  ;;  %18 = sbr.rel (!%p16_p5) target bundleno = 6 (0x6), region = 78 }
  0x4c   :  { %214 = vsyncpa [#allocation3], 1 }
  0x4d   :  { %216 = vsyncpa [#allocation3 + $0x1], 1 }
  0x4e   :  { %217 = vsyncpa [#allocation6], 1 }
  0x4f   :  { %219 = vsyncpa [#allocation6 + $0x1], 1 }
  0x50   :  { %220 = vsyncpa [#allocation4], 1 }
  0x51   :  { %222 = vsyncpa [#allocation4 + $0x1], 1 }

// kernel: tpu_custom_call.1
= control target key start
LH: loop header
LB: loop body
LE: loop exit
PB: predicated region body
PF: predicated region fallthrough
CT: control target
= control target key end

     0   :  { %11 = vsyncpa [#allocation3], 0  ;;  %s390_s0 = inlined_call_operand.hbm [shape: f32[16,32], index: 0, kind: input, shape index: {}]   ;;  %s391_s1 = inlined_call_operand.hbm [shape: f32[32,96], index: 1, kind: input, shape index: {}]   ;;  %s392_s2 = inlined_call_operand.vmem [shape: f32[1,96], index: 2, kind: input, shape index: {}]   ;;  %s393_s3 = inlined_call_operand.hbm [shape: f32[16,32], index: 3, kind: output, shape index: {0}]   ;;  %s394_s4 = inlined_call_operand.hbm [shape: f32[16,32], index: 4, kind: output, shape index: {1}]   ;;  %s395_s5 = inlined_call_operand.hbm [shape: f32[16,32], index: 5, kind: output, shape index: {2}]  }
   0x1   :  { %12 = vsyncpa [#allocation6], 0 }
   0x2   :  { %13 = vsyncpa [#allocation4], 0 }
   0x3   :  { %14 = vsyncpa [#allocation9], 0  ;;  %s19_s20 = sshll.u32 %s390_s0, 4  ;;  %s310_s21 = smov [#allocation2]   ;;  %s20_s20 = int_to_ptr.hbm [resolvable:$true] %s19_s20 }
   0x4   :  { %s21_s22 = sshll.u32 %s310_s21, 4  ;;  %s32_s25 = sshll.u32 %s391_s1, 4  ;;  %s22_s22 = int_to_ptr.vmem [resolvable:$true] %s21_s22  ;;  %s33_s25 = int_to_ptr.hbm [resolvable:$true] %s32_s25 }
   0x5   :  { %s311_s26 = smov 128   ;;  %s312_s27 = smov 8  }
   0x6   :  { %27 = dma.hbm_to_vmem [thread:$0]  %s20_s20, 256, %s22_s22, [#allocation3], %s311_s26, %s311_s26, %s312_s27  }
   0x7   :  { %s313_s28 = smov [#allocation5]  }
   0x8   :  { %s34_s29 = sshll.u32 %s313_s28, 4  ;;  %s35_s29 = int_to_ptr.vmem [resolvable:$true] %s34_s29 }
   0x9   :  { %40 = dma.hbm_to_vmem [thread:$0]  %s33_s25, 512, %s35_s29, [#allocation6], %s311_s26, %s311_s26, %s312_s27  }
   0xa   :  { %302 = dma.done.wait [#allocation3], 256  }
   0xb   :  { %303 = vsyncadd [#allocation3], 4294967040 }
   0xc   :  { %304 = dma.done.wait [#allocation6], 512  }
   0xd   :  { %305 = vsyncadd [#allocation6], 4294966784  ;;  %v56_v0 = vld [vmem:[#allocation5 + $0x18] sm:$0xff]  ;;  %v55_v1 = vld [vmem:[#allocation5 + $0x10] sm:$0xff]  ;;  %vm61_vm0 = vcmask 261120   ;;  %s117_s7 = sshll.u32 %s393_s3, 4  ;;  %s118_s7 = int_to_ptr.hbm [resolvable:$true] %s117_s7 }
   0xe   :  { %80 = vmatpush.msra.mxu0 %v56_v0  ;;  %168 = vmatpush.msra.mxu1 %v56_v0  ;;  %v54_v2 = vld [vmem:[#allocation5 + $0x8] sm:$0xff]  ;;  %v53_v3 = vld [vmem:[#allocation5] sm:$0xff]  ;;  %v51_v4 = vld [vmem:[#allocation2] sm:$0xff]  ;;  %s314_s8 = smov [#allocation7]   ;;  %s315_s10 = smov 64  }
   0xf   :  { %v52_v5 = vld [vmem:[#allocation2 + $0x8] sm:$0xff]  ;;  %v181_v6 = vld [vmem:[%s392_s2] ss:$0 sm:$0xff]  ;;  %s115_s9 = sshll.u32 %s314_s8, 4  ;;  %s316_s11 = smov 96   ;;  %s116_s9 = int_to_ptr.vmem [resolvable:$true] %s115_s9 }
  0x10   :  { %81 = vmatpush.msra.mxu0 %v55_v1  ;;  %169 = vmatpush.msra.mxu1 %v55_v1  ;;  %s317_s2 = smov [#allocation8]   ;;  %s130_s14 = sshll.u32 %s394_s4, 4  ;;  %s131_s14 = int_to_ptr.hbm [resolvable:$true] %s130_s14 }
  0x11   :  { %s128_s3 = sshll.u32 %s317_s2, 4  ;;  %s318_s15 = smov [#allocation10]   ;;  %s129_s3 = int_to_ptr.vmem [resolvable:$true] %s128_s3 }
  0x12   :  { %82 = vmatpush.msra.mxu0 %v54_v2  ;;  %170 = vmatpush.msra.mxu1 %v54_v2  ;;  %s141_s16 = sshll.u32 %s318_s15, 4  ;;  %s143_s19 = sshll.u32 %s395_s5, 4  ;;  %s142_s16 = int_to_ptr.vmem [resolvable:$true] %s141_s16  ;;  %s144_s19 = int_to_ptr.hbm [resolvable:$true] %s143_s19 }
  0x14   :  { %83 = vmatpush.msra.mxu0 %v53_v3  ;;  %171 = vmatpush.msra.mxu1 %v53_v3 }
  0x15   :  { %166 = vmatmul.msk.f32.vlgmr.msra.gmra.mxu0 %vm61_vm0, %v51_v4  ;;  %167 = vmatmul.msk.f32.vlgmr.msra.gmra.mxu1 %vm61_vm0, %v52_v5 }
  0x92   :  { %v85_v7 = vpop.f32.mrf.mxu0  ;;  %v88_v8 = vpop.f32.mrf.mxu1 }
  0x93   :  { %v86_v9 = vadd.f32 %v181_v6, %v85_v7  ;;  %v89_v10 = vadd.f32 %v181_v6, %v88_v8 }
  0x95   :  { %91 = vst.msk [vmem:[#allocation7] sm:$0xff] %vm61_vm0, %v86_v9  ;;  %103 = vrot.lane.b32.xlu1 %v86_v9, %s315_s10  ;;  %95 = vrot.lane.b32.xlu0 %v86_v9, %s316_s11 }
  0x96   :  { %92 = vst.msk [vmem:[#allocation7 + $0x8] sm:$0xff] %vm61_vm0, %v89_v10 }
  0x97   :  { %123 = dma.vmem_to_hbm [thread:$0]  %s116_s9, 256, %s118_s7, [#allocation4], %s311_s26, %s311_s26, %s312_s27  }
  0x9d   :  { %105 = vrot.lane.b32.xlu1 %v89_v10, %s315_s10  ;;  %97 = vrot.lane.b32.xlu0 %v89_v10, %s316_s11 }
 0x107   :  { %v104_v11 = vpop.permute.xlu1 %103  ;;  %v96_v12 = vpop.permute.xlu0 %95 }
 0x108   :  { %109 = vst.msk [vmem:[#allocation10] sm:$0xff] %vm61_vm0, %v104_v11 }
 0x109   :  { %101 = vst.msk [vmem:[#allocation8] sm:$0xff] %vm61_vm0, %v96_v12 }
 0x10f   :  { %v106_v13 = vpop.permute.xlu1 %105  ;;  %v98_v14 = vpop.permute.xlu0 %97 }
 0x110   :  { %110 = vst.msk [vmem:[#allocation10 + $0x8] sm:$0xff] %vm61_vm0, %v106_v13 }
 0x111   :  { %102 = vst.msk [vmem:[#allocation8 + $0x8] sm:$0xff] %vm61_vm0, %v98_v14 }
 0x112   :  { %136 = dma.vmem_to_hbm [thread:$0]  %s129_s3, 256, %s131_s14, [#allocation9], %s311_s26, %s311_s26, %s312_s27  }
 0x113   :  { %149 = dma.vmem_to_hbm [thread:$0]  %s142_s16, 256, %s144_s19, [#allocation9], %s311_s26, %s311_s26, %s312_s27  }
 0x114   :  { %306 = dma.done.wait [#allocation4], 256  }
 0x115   :  { %307 = vsyncadd [#allocation4], 4294967040 }
 0x116   :  { %308 = dma.done.wait [#allocation9], 512  }
 0x117   :  { %309 = vsyncadd [#allocation9], 4294966784 }
 0x118   :  { %162 = vsyncpa [#allocation3], 1 }
 0x119   :  { %163 = vsyncpa [#allocation6], 1 }
 0x11a   :  { %164 = vsyncpa [#allocation4], 1 }
 0x11b   :  { %165 = vsyncpa [#allocation9], 1 }

</bundles_post_ra>
